<compile_context>
chip_gen: v7x
topology: tpu7x:2x2x1
jax: 0.10.0
libtpu: 0.0.40
codegen_flags: <defaults>
</compile_context>

<pallas_src>
import jax
import jax.numpy as jnp
from jax.experimental import pallas as pl
from jax.experimental.pallas import tpu as pltpu

SUBLANE = 8  # f32 sublane width (second-to-last dim granularity)


def _round_up(x, m):
    return ((x + m - 1) // m) * m


def mlp_kernel(x_ref, w1_ref, b1_ref, w2_ref, b2_ref, w3_ref, b3_ref, o_ref):
    # Fully fused forward pass; intermediates never touch HBM.
    x = x_ref[...]
    h = jnp.dot(x, w1_ref[...], preferred_element_type=jnp.float32) + b1_ref[...]
    h = jnp.maximum(h, 0.0)
    h = jnp.dot(h, w2_ref[...], preferred_element_type=jnp.float32) + b2_ref[...]
    h = jnp.maximum(h, 0.0)
    o_ref[...] = (
        jnp.dot(h, w3_ref[...], preferred_element_type=jnp.float32) + b3_ref[...]
    ).astype(o_ref.dtype)


def _choose_block_b(B, in_dim, out_dim, block_b):
    """Pick the batch tile: large (amortize grid-step overhead), VMEM-safe,
    never larger than the batch, and >=2 grid steps for big batches (v7x)."""
    B_r = _round_up(B, SUBLANE)

    # Cap by batch size.
    block_b = min(block_b, B_r)

    # Cap so double-buffered x/out tiles stay well under v5e's 16 MiB scoped
    # VMEM default (budget ~6 MiB for the pipelined buffers; weights are tiny).
    bytes_per_row = 4 * (in_dim + out_dim)
    vmem_rows = max(SUBLANE, (6 * 1024 * 1024) // (2 * bytes_per_row))
    vmem_rows = (vmem_rows // SUBLANE) * SUBLANE
    block_b = min(block_b, vmem_rows)

    block_b = max(SUBLANE, _round_up(block_b, SUBLANE))

    # v7x: guarantee at least 2 grid steps when the batch is big enough so the
    # "parallel" batch axis can feed both TensorCores (no-op on v5e/v6e).
    if B_r > 2 * SUBLANE and B_r < 2 * block_b:
        block_b = _round_up((B_r + 1) // 2, SUBLANE)

    return block_b


def simple_nn_forward(x, params, *, block_b=2048):
    """x: (B, input_dim) float32. params: dict of w1,b1,w2,b2,w3,b3."""
    B, in_dim = x.shape
    h1 = params["w1"].shape[1]   # 64
    h2 = params["w2"].shape[1]   # 32
    out_dim = params["w3"].shape[1]

    block_b = _choose_block_b(B, in_dim, out_dim, block_b)
    grid = (pl.cdiv(B, block_b),)   # ragged batch -> Pallas clips the edge block

    in_specs = [
        pl.BlockSpec((block_b, in_dim), lambda i: (i, 0)),  # x tile (batch-tiled)
        pl.BlockSpec((in_dim, h1), lambda i: (0, 0)),       # w1 (VMEM-resident)
        pl.BlockSpec((1, h1), lambda i: (0, 0)),            # b1
        pl.BlockSpec((h1, h2), lambda i: (0, 0)),           # w2
        pl.BlockSpec((1, h2), lambda i: (0, 0)),            # b2
        pl.BlockSpec((h2, out_dim), lambda i: (0, 0)),      # w3
        pl.BlockSpec((1, out_dim), lambda i: (0, 0)),       # b3
    ]
    out_spec = pl.BlockSpec((block_b, out_dim), lambda i: (i, 0))  # unpadded output

    return pl.pallas_call(
        mlp_kernel,
        out_shape=jax.ShapeDtypeStruct((B, out_dim), jnp.float32),
        grid_spec=pltpu.PrefetchScalarGridSpec(
            num_scalar_prefetch=0,
            grid=grid,
            in_specs=in_specs,
            out_specs=out_spec,
        ),
        compiler_params=pltpu.CompilerParams(
            # Batch axis is embarrassingly parallel -> megacore sharding on v7x.
            dimension_semantics=("parallel",),
        ),
    )(x, params["w1"], params["b1"], params["w2"], params["b2"],
      params["w3"], params["b3"])


def init_params(key, input_dim, output_dim):
    """Deterministic synthetic init (PyTorch-style uniform bounds)."""
    # TODO(synk): real weights come from a torch checkpoint / joblib-loaded
    # random forest (input_dim = rf.n_features_in_); synthetic init used here.
    ks = jax.random.split(key, 6)

    def lin(kw, kb, fan_in, fan_out):
        bound = 1.0 / jnp.sqrt(fan_in)
        w = jax.random.uniform(kw, (fan_in, fan_out), jnp.float32, -bound, bound)
        b = jax.random.uniform(kb, (1, fan_out), jnp.float32, -bound, bound)
        return w, b

    w1, b1 = lin(ks[0], ks[1], input_dim, 64)
    w2, b2 = lin(ks[2], ks[3], 64, 32)
    w3, b3 = lin(ks[4], ks[5], 32, output_dim)
    return {"w1": w1, "b1": b1, "w2": w2, "b2": b2, "w3": w3, "b3": b3}


def _reference(x, params):
    h = jnp.maximum(x @ params["w1"] + params["b1"], 0.0)
    h = jnp.maximum(h @ params["w2"] + params["b2"], 0.0)
    return h @ params["w3"] + params["b3"]


if __name__ == "__main__":
    key = jax.random.PRNGKey(0)
    k_x, k_p, k_x2 = jax.random.split(key, 3)

    # Small shapes consistent with the module (input_dim is synthetic since the
    # random-forest checkpoint defining n_features_in_ is not loaded).
    batch, input_dim, output_dim = 8, 32, 4

    params = init_params(k_p, input_dim, output_dim)

    # --- small batch (single tiny tile) ---
    x = jax.random.normal(k_x, (batch, input_dim), dtype=jnp.float32)
    out = jax.block_until_ready(simple_nn_forward(x, params))
    ref = _reference(x, params)
    assert out.shape == (batch, output_dim)
    assert jnp.allclose(out, ref, atol=1e-5, rtol=1e-5)

    # --- ragged larger batch (edge-block clipping + 2-step grid for v7x) ---
    x2 = jax.random.normal(k_x2, (1000, input_dim), dtype=jnp.float32)
    out2 = jax.block_until_ready(simple_nn_forward(x2, params))
    ref2 = _reference(x2, params)
    assert out2.shape == (1000, output_dim)
    assert jnp.allclose(out2, ref2, atol=1e-5, rtol=1e-5)

    print("KERNEL_OK")
</pallas_src>

<mosaic_0001>
module attributes {stable_mosaic.version = 11 : i64} {
  func.func @mlp_kernel(%arg0: i32, %arg1: memref<8x32xf32, #tpu.memory_space<vmem>>, %arg2: memref<32x64xf32, #tpu.memory_space<vmem>>, %arg3: memref<1x64xf32, #tpu.memory_space<vmem>>, %arg4: memref<64x32xf32, #tpu.memory_space<vmem>>, %arg5: memref<1x32xf32, #tpu.memory_space<vmem>>, %arg6: memref<32x4xf32, #tpu.memory_space<vmem>>, %arg7: memref<1x4xf32, #tpu.memory_space<vmem>>, %arg8: memref<8x4xf32, #tpu.memory_space<vmem>>) attributes {dimension_semantics = [#tpu.dimension_semantics<parallel>], iteration_bounds = array<i64: 1>, scalar_prefetch = 0 : i64, scratch_operands = 0 : i64, tpu.core_type = #tpu.core_type<tc>, window_params = [{transform_indices = @transform_0, window_bounds = array<i64: 8, 32>}, {pipeline_mode = #tpu.pipeline_mode<synchronous>, transform_indices = @transform_1, window_bounds = array<i64: 32, 64>}, {pipeline_mode = #tpu.pipeline_mode<synchronous>, transform_indices = @transform_2, window_bounds = array<i64: 1, 64>}, {pipeline_mode = #tpu.pipeline_mode<synchronous>, transform_indices = @transform_3, window_bounds = array<i64: 64, 32>}, {pipeline_mode = #tpu.pipeline_mode<synchronous>, transform_indices = @transform_4, window_bounds = array<i64: 1, 32>}, {pipeline_mode = #tpu.pipeline_mode<synchronous>, transform_indices = @transform_5, window_bounds = array<i64: 32, 4>}, {pipeline_mode = #tpu.pipeline_mode<synchronous>, transform_indices = @transform_6, window_bounds = array<i64: 1, 4>}, {transform_indices = @transform_7, window_bounds = array<i64: 8, 4>}]} {
    %c0 = arith.constant 0 : index
    %c0_0 = arith.constant 0 : index
    %0 = vector.load %arg1[%c0, %c0_0] : memref<8x32xf32, #tpu.memory_space<vmem>>, vector<8x32xf32>
    %c0_1 = arith.constant 0 : index
    %c0_2 = arith.constant 0 : index
    %1 = vector.load %arg2[%c0_1, %c0_2] : memref<32x64xf32, #tpu.memory_space<vmem>>, vector<32x64xf32>
    %cst = arith.constant dense<0.000000e+00> : vector<8x64xf32>
    %2 = tpu.matmul %0, %1, %cst {dimension_numbers = #tpu.dot_dimension_numbers<[1], [0], [0], [1], [0, 0, 1, 1], [], []>} : vector<8x32xf32>, vector<32x64xf32>, vector<8x64xf32> -> vector<8x64xf32>
    %c0_3 = arith.constant 0 : index
    %c0_4 = arith.constant 0 : index
    %3 = vector.load %arg3[%c0_3, %c0_4] : memref<1x64xf32, #tpu.memory_space<vmem>>, vector<1x64xf32>
    %4 = vector.broadcast %3 : vector<1x64xf32> to vector<8x64xf32>
    %5 = arith.addf %2, %4 : vector<8x64xf32>
    %cst_5 = arith.constant 0.000000e+00 : f32
    %6 = vector.broadcast %cst_5 : f32 to vector<8x64xf32>
    %7 = arith.maximumf %5, %6 : vector<8x64xf32>
    %c0_6 = arith.constant 0 : index
    %c0_7 = arith.constant 0 : index
    %8 = vector.load %arg4[%c0_6, %c0_7] : memref<64x32xf32, #tpu.memory_space<vmem>>, vector<64x32xf32>
    %cst_8 = arith.constant dense<0.000000e+00> : vector<8x32xf32>
    %9 = tpu.matmul %7, %8, %cst_8 {dimension_numbers = #tpu.dot_dimension_numbers<[1], [0], [0], [1], [0, 0, 1, 1], [], []>} : vector<8x64xf32>, vector<64x32xf32>, vector<8x32xf32> -> vector<8x32xf32>
    %c0_9 = arith.constant 0 : index
    %c0_10 = arith.constant 0 : index
    %10 = vector.load %arg5[%c0_9, %c0_10] : memref<1x32xf32, #tpu.memory_space<vmem>>, vector<1x32xf32>
    %11 = vector.broadcast %10 : vector<1x32xf32> to vector<8x32xf32>
    %12 = arith.addf %9, %11 : vector<8x32xf32>
    %cst_11 = arith.constant 0.000000e+00 : f32
    %13 = vector.broadcast %cst_11 : f32 to vector<8x32xf32>
    %14 = arith.maximumf %12, %13 : vector<8x32xf32>
    %c0_12 = arith.constant 0 : index
    %c0_13 = arith.constant 0 : index
    %15 = vector.load %arg6[%c0_12, %c0_13] : memref<32x4xf32, #tpu.memory_space<vmem>>, vector<32x4xf32>
    %cst_14 = arith.constant dense<0.000000e+00> : vector<8x4xf32>
    %16 = tpu.matmul %14, %15, %cst_14 {dimension_numbers = #tpu.dot_dimension_numbers<[1], [0], [0], [1], [0, 0, 1, 1], [], []>} : vector<8x32xf32>, vector<32x4xf32>, vector<8x4xf32> -> vector<8x4xf32>
    %c0_15 = arith.constant 0 : index
    %c0_16 = arith.constant 0 : index
    %17 = vector.load %arg7[%c0_15, %c0_16] : memref<1x4xf32, #tpu.memory_space<vmem>>, vector<1x4xf32>
    %18 = vector.broadcast %17 : vector<1x4xf32> to vector<8x4xf32>
    %19 = arith.addf %16, %18 : vector<8x4xf32>
    %c0_17 = arith.constant 0 : index
    %c0_18 = arith.constant 0 : index
    %20 = vector.load %arg8[%c0_17, %c0_18] : memref<8x4xf32, #tpu.memory_space<vmem>>, vector<8x4xf32>
    tpu.vector_store %arg8[%c0_17, %c0_18], %19 {strides = array<i32>} : memref<8x4xf32, #tpu.memory_space<vmem>>, vector<8x4xf32>,
    return
  }
  func.func @transform_0(%arg0: i32) -> (i32, i32) {
    %c0_i32 = arith.constant 0 : i32
    %c0_i32_0 = arith.constant 0 : i32
    return %arg0, %c0_i32 : i32, i32
  }
  func.func @transform_1(%arg0: i32) -> (i32, i32) {
    %c0_i32 = arith.constant 0 : i32
    %c0_i32_0 = arith.constant 0 : i32
    %c0_i32_1 = arith.constant 0 : i32
    return %c0_i32, %c0_i32_0 : i32, i32
  }
  func.func @transform_2(%arg0: i32) -> (i32, i32) {
    %c0_i32 = arith.constant 0 : i32
    %c0_i32_0 = arith.constant 0 : i32
    %c0_i32_1 = arith.constant 0 : i32
    return %c0_i32, %c0_i32_0 : i32, i32
  }
  func.func @transform_3(%arg0: i32) -> (i32, i32) {
    %c0_i32 = arith.constant 0 : i32
    %c0_i32_0 = arith.constant 0 : i32
    %c0_i32_1 = arith.constant 0 : i32
    return %c0_i32, %c0_i32_0 : i32, i32
  }
  func.func @transform_4(%arg0: i32) -> (i32, i32) {
    %c0_i32 = arith.constant 0 : i32
    %c0_i32_0 = arith.constant 0 : i32
    %c0_i32_1 = arith.constant 0 : i32
    return %c0_i32, %c0_i32_0 : i32, i32
  }
  func.func @transform_5(%arg0: i32) -> (i32, i32) {
    %c0_i32 = arith.constant 0 : i32
    %c0_i32_0 = arith.constant 0 : i32
    %c0_i32_1 = arith.constant 0 : i32
    return %c0_i32, %c0_i32_0 : i32, i32
  }
  func.func @transform_6(%arg0: i32) -> (i32, i32) {
    %c0_i32 = arith.constant 0 : i32
    %c0_i32_0 = arith.constant 0 : i32
    %c0_i32_1 = arith.constant 0 : i32
    return %c0_i32, %c0_i32_0 : i32, i32
  }
  func.func @transform_7(%arg0: i32) -> (i32, i32) {
    %c0_i32 = arith.constant 0 : i32
    %c0_i32_0 = arith.constant 0 : i32
    return %arg0, %c0_i32 : i32, i32
  }
}

</mosaic_0001>

<bundles_post_ra>
// kernel: tpu_custom_call.1
= control target key start
LH: loop header
LB: loop body
LE: loop exit
PB: predicated region body
PF: predicated region fallthrough
CT: control target
= control target key end

     0   :  { %v386_v0 = vmov 0.0|0.0   ;;  %vm387_vm0 = vmmov 0   ;;  %v388_v4 = vmov 0.0   ;;  %vm38_vm1 = vcmask 261120   ;;  %s497_s1 = inlined_call_operand.vmem [shape: f32[32,64], index: 1, kind: input, shape index: {}]   ;;  %s498_s3 = inlined_call_operand.vmem [shape: f32[64,32], index: 3, kind: input, shape index: {}]   ;;  %s499_s0 = inlined_call_operand.vmem [shape: f32[8,32], index: 0, kind: input, shape index: {}]   ;;  %s500_s5 = inlined_call_operand.vmem [shape: f32[32,4], index: 5, kind: input, shape index: {}]   ;;  %s501_s2 = inlined_call_operand.vmem [shape: f32[1,64], index: 2, kind: input, shape index: {}]   ;;  %s502_s4 = inlined_call_operand.vmem [shape: f32[1,32], index: 4, kind: input, shape index: {}]   ;;  %s503_s6 = inlined_call_operand.vmem [shape: f32[1,4], index: 6, kind: input, shape index: {}]   ;;  %s504_s7 = inlined_call_operand.vmem [shape: f32[8,4], index: 7, kind: output, shape index: {}]  }
   0x1   :  { %359 = vmatprep.subr.bf16.mxu0 %v386_v0  ;;  %v27_v1 = vld [vmem:[%s497_s1] sm:$0xff]  ;;  %v28_v2 = vld [vmem:[%s497_s1 + $0x8] sm:$0xff]  ;;  %v29_v3 = vld [vmem:[%s497_s1 + $0x10] sm:$0xff]  ;;  %326 = vmatprep.mubr.msk.f32.mxu0 %vm387_vm0, %v388_v4  ;;  %vm128_vm2 = vcmask 523264   ;;  %vm287_vm3 = vcmask 31744  }
   0x2   :  { %v360_v5 = vpack.c.bf16 %v28_v2, %v27_v1  ;;  %v30_v6 = vld [vmem:[%s497_s1 + $0x18] sm:$0xff]  ;;  %365 = vmatprep.subr.bf16.mxu1 %v386_v0  ;;  %v113_v7 = vld [vmem:[%s498_s3] sm:$0xff]  ;;  %345 = vmatprep.mubr.msk.f32.mxu1 %vm387_vm0, %v388_v4  ;;  %v114_v8 = vld [vmem:[%s498_s3 + $0x8] sm:$0xff] }
   0x3   :  { %v115_v9 = vld [vmem:[%s498_s3 + $0x10] sm:$0xff]  ;;  %v116_v10 = vld [vmem:[%s498_s3 + $0x18] sm:$0xff]  ;;  %v363_v11 = vpack.c.bf16 %v30_v6, %v29_v3  ;;  %v366_v12 = vpack.c.bf16 %v114_v8, %v113_v7  ;;  %v117_v14 = vld [vmem:[%s498_s3 + $0x20] sm:$0xff] }
   0x4   :  { %361 = vmatpush3.bf16.msra.mxu0 %v360_v5  ;;  %v369_v13 = vpack.c.bf16 %v116_v10, %v115_v9  ;;  %v118_v15 = vld [vmem:[%s498_s3 + $0x28] sm:$0xff]  ;;  %v26_v16 = vld [vmem:[%s499_s0] sm:$0xff]  ;;  %v119_v18 = vld [vmem:[%s498_s3 + $0x30] sm:$0xff] }
   0x5   :  { %362 = vmatprep.subr.bf16.mxu0 %v386_v0  ;;  %367 = vmatpush3.bf16.msra.mxu1 %v366_v12  ;;  %v372_v17 = vpack.c.bf16 %v118_v15, %v117_v14  ;;  %v120_v19 = vld [vmem:[%s498_s3 + $0x38] sm:$0xff]  ;;  %v203_v21 = vld [vmem:[%s500_s5] sm:$0xff]  ;;  %v204_v22 = vld [vmem:[%s500_s5 + $0x8] sm:$0xff] }
   0x6   :  { %368 = vmatprep.subr.bf16.mxu1 %v386_v0  ;;  %v375_v20 = vpack.c.bf16 %v120_v19, %v119_v18  ;;  %v378_v23 = vpack.c.bf16 %v204_v22, %v203_v21  ;;  %v293_v24 = vld [vmem:[%s501_s2] ss:$0 sm:$0xff]  ;;  %v205_v29 = vld [vmem:[%s500_s5 + $0x10] sm:$0xff]  ;;  %v206_v30 = vld [vmem:[%s500_s5 + $0x18] sm:$0xff] }
   0x7   :  { %v381_v31 = vpack.c.bf16 %v206_v30, %v205_v29  ;;  %v295_v32 = vld [vmem:[%s502_s4] ss:$0 sm:$0xff] }
   0x8   :  { %364 = vmatpush3.bf16.msra.mxu0 %v363_v11  ;;  %v297_v37 = vld [vmem:[%s503_s6] ss:$0 sm:$0xff] }
   0x9   :  { %377 = vmatprep.subr.bf16.mxu0 %v386_v0  ;;  %370 = vmatpush3.bf16.msra.mxu1 %v369_v13 }
   0xa   :  { %371 = vmatprep.subr.bf16.mxu1 %v386_v0 }
   0xb   :  { %327 = vmatmul.mubr.msk.f32.vlgmr.msra.gmra.mrb[0].mxu0 %vm38_vm1, %v26_v16 }
   0xc   :  { %356 = vmatprep.mubr.msk.f32.mxu0 %vm387_vm0, %v388_v4  ;;  %379 = vmatpush3.bf16.msra.mxu0 %v378_v23 }
   0xd   :  { %373 = vmatpush3.bf16.msra.mxu1 %v372_v17  ;;  %380 = vmatprep.subr.bf16.mxu0 %v386_v0 }
   0xe   :  { %374 = vmatprep.subr.bf16.mxu1 %v386_v0 }
  0x10   :  { %382 = vmatpush3.bf16.msra.mxu0 %v381_v31 }
  0x11   :  { %376 = vmatpush3.bf16.msra.mxu1 %v375_v20 }
  0xde   :  { %v108_v25 = vpop.f32.mrb[0].mxu0 }
  0xdf   :  { %v109_v26 = vadd.f32 %v293_v24, %v108_v25  ;;  %v328_v27 = vpop.f32.mrb[1].mxu0 }
  0xe1   :  { %v112_v28 = vmax.f32 %v109_v26, 0.0 }
  0xe3   :  { %346 = vmatmul.mubr.msk.f32.vlgmr.msra.gmra.mrb[0].mxu1 %vm128_vm2, %v112_v28 }
 0x1b6   :  { %v198_v33 = vpop.f32.mrb[0].mxu1 }
 0x1b7   :  { %v199_v34 = vadd.f32 %v295_v32, %v198_v33  ;;  %v347_v35 = vpop.f32.mrb[1].mxu1 }
 0x1b9   :  { %v202_v36 = vmax.f32 %v199_v34, 0.0 }
 0x1bb   :  { %357 = vmatmul.mubr.msk.f32.vlgmr.msra.gmra.mrb[2].mxu0 %vm38_vm1, %v202_v36 }
 0x28e   :  { %v283_v38 = vpop.f32.mrb[2].mxu0 }
 0x28f   :  { %v284_v39 = vadd.f32 %v297_v37, %v283_v38  ;;  %v358_v40 = vpop.f32.mrb[3].mxu0 }
 0x291   :  { %288 = vst.msk [vmem:[%s504_s7] sm:$0xff] %vm287_vm3, %v284_v39 }

</bundles_post_ra>
